<compile_context>
chip_gen: v5e
topology: v5e:2x2
jax: 0.10.0
libtpu: 0.0.40
codegen_flags: <defaults>
</compile_context>

<pallas_src>
import functools

import jax
import jax.numpy as jnp
from jax.experimental import pallas as pl
from jax.experimental.pallas import tpu as pltpu


def _round_up(x, m):
    return (x + m - 1) // m * m


def _conv_tile(x_win, w, *, kernel_size, stride, dilation, tl):
    """One conv tile as a single folded MXU matmul.

    x_win : (C_in, >= tl*stride + dilation*(K-1))  input window (native dtype)
    w     : (C_out, K*C_in)                        folded weight
    returns (C_out, tl) float32 accumulator.
    """
    c_in = x_win.shape[0]
    taps = []
    for kk in range(kernel_size):                     # static, unrolled
        s0 = kk * dilation
        if stride == 1:
            taps.append(x_win[:, s0:s0 + tl])
        else:
            # TODO(synk): apply the stride in the DMA/window instead of a
            # dense load + subsample (perf item for stride > 1 only).
            dense = x_win[:, s0:s0 + tl * stride]
            taps.append(dense.reshape(c_in, tl, stride)[:, :, 0])
    # TODO(synk): pltpu.roll-based tap extraction + sublane-padded fold would
    # move this relayout work onto the XLU; kept as slices+concat (HBM-bound).
    rhs = taps[0] if kernel_size == 1 else jnp.concatenate(taps, axis=0)
    return jax.lax.dot_general(w, rhs, (((1,), (0,)), ((), ())),
                               preferred_element_type=jnp.float32)


def _stats_kernel(x_ref, h_ref, w_ref, stats_ref, *, kernel_size, stride,
                  dilation, tl, l_out):
    """Pass A: per-batch per-channel [sum, sumsq] of the conv output.

    x_ref     : (1, C_in, tl*stride)  main input block
    h_ref     : (1, C_in, halo_w)     halo block (next 128-aligned chunk)
    w_ref     : (C_out, K*C_in)
    stats_ref : (1, C_out, 2)         resident accumulator across the L axis
    """
    j = pl.program_id(1)
    x_win = jnp.concatenate([x_ref[0], h_ref[0]], axis=1)
    acc = _conv_tile(x_win, w_ref[...], kernel_size=kernel_size,
                     stride=stride, dilation=dilation, tl=tl)     # (C_out, tl)

    # Mask out tail-tile columns past the true L_out.
    valid = l_out - j * tl
    col = jax.lax.broadcasted_iota(jnp.int32, acc.shape, 1)
    accv = jnp.where(col < valid, acc, 0.0)
    s = jnp.sum(accv, axis=1, keepdims=True)
    ss = jnp.sum(accv * accv, axis=1, keepdims=True)
    part = jnp.concatenate([s, ss], axis=1)                       # (C_out, 2)

    @pl.when(j == 0)
    def _():
        stats_ref[0] = jnp.zeros_like(part)

    stats_ref[0] = stats_ref[0] + part


def _apply_kernel(x_ref, h_ref, w_ref, scale_ref, shift_ref, o_ref, *,
                  kernel_size, stride, dilation, tl, do_act):
    """Pass B: recompute conv tile, apply y*scale + shift (+ReLU), write out.

    scale_ref / shift_ref : (C_out, 1) f32 precomputed from the global stats.
    o_ref                 : (1, C_out, tl) — edge block masked by Pallas.
    """
    x_win = jnp.concatenate([x_ref[0], h_ref[0]], axis=1)
    acc = _conv_tile(x_win, w_ref[...], kernel_size=kernel_size,
                     stride=stride, dilation=dilation, tl=tl)     # (C_out, tl)
    y = acc * scale_ref[...] + shift_ref[...]
    if do_act:
        y = jnp.maximum(y, 0.0)
    o_ref[0] = y.astype(o_ref.dtype)


def conv_module_forward(x, weight, gamma, beta, *, stride=1, padding=0,
                        dilation=1, groups=1, eps=1e-5, activate=True,
                        norm=True):
    """Pallas equivalent of ConvModule.forward(x, activate, norm)."""
    assert groups == 1  # TODO(synk): grouped conv not implemented in this kernel
    n, c_in, l = x.shape
    c_out, c_in_w, k = weight.shape
    assert c_in_w == c_in
    l_out = (l + 2 * padding - dilation * (k - 1) - 1) // stride + 1
    assert l_out > 0

    in_bytes = jnp.dtype(x.dtype).itemsize
    halo = dilation * (k - 1)
    halo_w = _round_up(max(halo, 1), 128)             # 128-aligned halo block

    # L_out tile: lane-dense (multiple of 128 and of halo_w), capped at 1024,
    # and shrunk if the double-buffered block footprint would get large.
    tl = _round_up(min(_round_up(l_out, 128), 1024), halo_w)
    while tl > halo_w and (
            2 * c_in * (tl * stride + halo_w) * in_bytes      # in blocks (x2)
            + 2 * c_out * tl * 4                              # out tile (x2)
            + (k * c_in + 2 * c_out) * tl * 4) > 12 * 2**20:  # temporaries
        tl = _round_up(tl // 2, halo_w)
    num_lt = pl.cdiv(l_out, tl)

    # Pad once: conv left-padding plus a right tail so every main + halo block
    # is in-bounds (tail columns are conv-of-zeros; masked from stats and
    # never written to the unpadded output).
    l_pad = num_lt * tl * stride + halo_w
    x_pad = jnp.pad(x, ((0, 0), (0, 0), (padding, l_pad - l - padding)))

    # Fold the K taps into the matmul contraction: (C_out, K*C_in).
    w2 = jnp.transpose(weight, (0, 2, 1)).reshape(c_out, k * c_in)

    main_spec = pl.BlockSpec((1, c_in, tl * stride), lambda i, j: (i, 0, j))
    halo_blocks_per_tile = (tl * stride) // halo_w    # integer by construction
    halo_spec = pl.BlockSpec(
        (1, c_in, halo_w),
        lambda i, j: (i, 0, (j + 1) * halo_blocks_per_tile))
    w_spec = pl.BlockSpec((c_out, k * c_in), lambda i, j: (0, 0))
    vec_spec = pl.BlockSpec((c_out, 1), lambda i, j: (0, 0))

    # Explicit VMEM budget: double-buffered blocks + in-kernel temporaries,
    # with margin; capped at 56 MiB so it also fits v7x's 64 MiB VMEM.
    est = (2 * c_in * (tl * stride + halo_w) * in_bytes
           + 2 * c_out * tl * 4
           + (k * c_in + 2 * c_out) * tl * 4
           + 2 * c_out * k * c_in * in_bytes + 4096)
    vmem_limit = int(min(max(4 * est, 32 * 2**20), 56 * 2**20))

    if norm:
        stats_kernel = functools.partial(
            _stats_kernel, kernel_size=k, stride=stride, dilation=dilation,
            tl=tl, l_out=l_out)
        stats = pl.pallas_call(
            stats_kernel,
            grid=(n, num_lt),
            in_specs=[main_spec, halo_spec, w_spec],
            out_specs=pl.BlockSpec((1, c_out, 2), lambda i, j: (i, 0, 0)),
            out_shape=jax.ShapeDtypeStruct((n, c_out, 2), jnp.float32),
            compiler_params=pltpu.CompilerParams(
                dimension_semantics=("parallel", "arbitrary"),
                vmem_limit_bytes=vmem_limit),
        )(x_pad, x_pad, w2)

        # Tiny XLA combine + hoisted BN affine (scale/shift) — once, not per tile.
        tot = jnp.sum(stats, axis=0)                       # (C_out, 2)
        count = float(n * l_out)
        mean = tot[:, 0] / count
        # TODO(synk): E[x^2]-E[x]^2 in f32 can cancel for badly-scaled
        # activations; a shifted sum-of-squares would be more robust.
        var = tot[:, 1] / count - mean * mean
        scale = gamma.astype(jnp.float32) * jax.lax.rsqrt(var + eps)
        shift = beta.astype(jnp.float32) - mean * scale
    else:
        scale = jnp.ones((c_out,), jnp.float32)
        shift = jnp.zeros((c_out,), jnp.float32)

    apply_kernel = functools.partial(
        _apply_kernel, kernel_size=k, stride=stride, dilation=dilation,
        tl=tl, do_act=activate)
    out = pl.pallas_call(
        apply_kernel,
        grid=(n, num_lt),
        in_specs=[main_spec, halo_spec, w_spec, vec_spec, vec_spec],
        out_specs=pl.BlockSpec((1, c_out, tl), lambda i, j: (i, 0, j)),
        out_shape=jax.ShapeDtypeStruct((n, c_out, l_out), x.dtype),
        compiler_params=pltpu.CompilerParams(
            dimension_semantics=("parallel", "parallel"),
            vmem_limit_bytes=vmem_limit),
    )(x_pad, x_pad, w2, scale.reshape(c_out, 1), shift.reshape(c_out, 1))
    return out


def _reference(x, weight, gamma, beta, *, stride, padding, dilation, eps,
               activate, norm):
    y = jax.lax.conv_general_dilated(
        x, weight, window_strides=(stride,), padding=[(padding, padding)],
        rhs_dilation=(dilation,), dimension_numbers=('NCH', 'OIH', 'NCH'))
    if norm:
        mean = jnp.mean(y, axis=(0, 2), keepdims=True)
        var = jnp.mean((y - mean) ** 2, axis=(0, 2), keepdims=True)
        y = ((y - mean) / jnp.sqrt(var + eps)
             * gamma.reshape(1, -1, 1) + beta.reshape(1, -1, 1))
    if activate:
        y = jnp.maximum(y, 0.0)
    return y


if __name__ == "__main__":
    # Module hyperparameters (synthetic, deterministic).
    in_channels, out_channels, kernel_size = 4, 8, 3
    stride, padding, dilation, groups = 1, 1, 1, 1
    batch, length = 2, 16

    key = jax.random.PRNGKey(0)
    kx, kw = jax.random.split(key)
    x = jax.random.normal(kx, (batch, in_channels, length), jnp.float32)
    weight = (jax.random.normal(
        kw, (out_channels, in_channels, kernel_size), jnp.float32)
        * (1.0 / (in_channels * kernel_size) ** 0.5))
    gamma = 1.0 + 0.05 * jnp.arange(out_channels, dtype=jnp.float32)
    beta = 0.01 * jnp.arange(out_channels, dtype=jnp.float32)

    out = conv_module_forward(
        x, weight, gamma, beta, stride=stride, padding=padding,
        dilation=dilation, groups=groups, activate=True, norm=True)
    out = jax.block_until_ready(out)

    ref = _reference(x, weight, gamma, beta, stride=stride, padding=padding,
                     dilation=dilation, eps=1e-5, activate=True, norm=True)
    assert out.shape == ref.shape
    assert jnp.allclose(out, ref, atol=1e-4, rtol=1e-4)
    print("KERNEL_OK")
</pallas_src>

<mosaic_0001>
module attributes {stable_mosaic.version = 11 : i64} {
  func.func @_stats_kernel(%arg0: i32, %arg1: i32, %arg2: memref<1x4x128xf32, #tpu.memory_space<vmem>>, %arg3: memref<1x4x128xf32, #tpu.memory_space<vmem>>, %arg4: memref<8x12xf32, #tpu.memory_space<vmem>>, %arg5: memref<1x8x2xf32, #tpu.memory_space<vmem>>) attributes {dimension_semantics = [#tpu.dimension_semantics<parallel>, #tpu.dimension_semantics<arbitrary>], iteration_bounds = array<i64: 2, 1>, scalar_prefetch = 0 : i64, scratch_operands = 0 : i64, tpu.core_type = #tpu.core_type<tc>, window_params = [{transform_indices = @transform_0, window_bounds = array<i64: 1, 4, 128>}, {transform_indices = @transform_1, window_bounds = array<i64: 1, 4, 128>}, {pipeline_mode = #tpu.pipeline_mode<synchronous>, transform_indices = @transform_2, window_bounds = array<i64: 8, 12>}, {transform_indices = @transform_3, window_bounds = array<i64: 1, 8, 2>}]} {
    %c0 = arith.constant 0 : index
    %c0_0 = arith.constant 0 : index
    %c0_1 = arith.constant 0 : index
    %0 = vector.load %arg2[%c0, %c0_0, %c0_1] : memref<1x4x128xf32, #tpu.memory_space<vmem>>, vector<1x4x128xf32>
    %1 = vector.shape_cast %0 : vector<1x4x128xf32> to vector<4x128xf32>
    %c0_2 = arith.constant 0 : index
    %c0_3 = arith.constant 0 : index
    %c0_4 = arith.constant 0 : index
    %2 = vector.load %arg3[%c0_2, %c0_3, %c0_4] : memref<1x4x128xf32, #tpu.memory_space<vmem>>, vector<1x4x128xf32>
    %3 = vector.shape_cast %2 : vector<1x4x128xf32> to vector<4x128xf32>
    %4 = tpu.concatenate %1, %3 in 1 : vector<4x128xf32>, vector<4x128xf32> -> vector<4x256xf32>
    %c0_5 = arith.constant 0 : index
    %c0_6 = arith.constant 0 : index
    %5 = vector.load %arg4[%c0_5, %c0_6] : memref<8x12xf32, #tpu.memory_space<vmem>>, vector<8x12xf32>
    %6 = vector.extract_strided_slice %4 {offsets = [0, 0], sizes = [4, 128], strides = [1, 1]} : vector<4x256xf32> to vector<4x128xf32>
    %7 = vector.extract_strided_slice %4 {offsets = [0, 1], sizes = [4, 128], strides = [1, 1]} : vector<4x256xf32> to vector<4x128xf32>
    %8 = vector.extract_strided_slice %4 {offsets = [0, 2], sizes = [4, 128], strides = [1, 1]} : vector<4x256xf32> to vector<4x128xf32>
    %9 = tpu.concatenate %6, %7, %8 in 0 : vector<4x128xf32>, vector<4x128xf32>, vector<4x128xf32> -> vector<12x128xf32>
    %cst = arith.constant dense<0.000000e+00> : vector<8x128xf32>
    %10 = tpu.matmul %5, %9, %cst {dimension_numbers = #tpu.dot_dimension_numbers<[1], [0], [0], [1], [0, 0, 1, 1], [], []>} : vector<8x12xf32>, vector<12x128xf32>, vector<8x128xf32> -> vector<8x128xf32>
    %c128_i32 = arith.constant 128 : i32
    %11 = arith.muli %arg1, %c128_i32 : i32
    %c16_i32 = arith.constant 16 : i32
    %12 = arith.subi %c16_i32, %11 : i32
    %13 = tpu.iota {dimensions = array<i32: 1>} : vector<8x128xi32>
    %14 = vector.broadcast %12 : i32 to vector<8x128xi32>
    %15 = arith.cmpi slt, %13, %14 : vector<8x128xi32>
    %cst_7 = arith.constant 0.000000e+00 : f32
    %16 = vector.broadcast %cst_7 : f32 to vector<8x128xf32>
    %17 = arith.select %15, %10, %16 : vector<8x128xi1>, vector<8x128xf32>
    %cst_8 = arith.constant dense<0.000000e+00> : vector<8xf32>
    %18 = vector.multi_reduction <add>, %17, %cst_8 [1] : vector<8x128xf32> to vector<8xf32>
    %19 = vector.shape_cast %18 : vector<8xf32> to vector<8x1xf32>
    %20 = arith.mulf %17, %17 : vector<8x128xf32>
    %cst_9 = arith.constant dense<0.000000e+00> : vector<8xf32>
    %21 = vector.multi_reduction <add>, %20, %cst_9 [1] : vector<8x128xf32> to vector<8xf32>
    %22 = vector.shape_cast %21 : vector<8xf32> to vector<8x1xf32>
    %23 = tpu.concatenate %19, %22 in 1 : vector<8x1xf32>, vector<8x1xf32> -> vector<8x2xf32>
    %c0_i32 = arith.constant 0 : i32
    %24 = arith.cmpi eq, %arg1, %c0_i32 : i32
    %25 = arith.extui %24 : i1 to i32
    %c0_i32_10 = arith.constant 0 : i32
    %26 = arith.cmpi ne, %25, %c0_i32_10 : i32
    scf.if %26 {
      %cst_17 = arith.constant 0.000000e+00 : f32
      %33 = vector.broadcast %cst_17 : f32 to vector<8x2xf32>
      %c0_18 = arith.constant 0 : index
      %c0_19 = arith.constant 0 : index
      %c0_20 = arith.constant 0 : index
      %34 = vector.load %arg5[%c0_18, %c0_19, %c0_20] : memref<1x8x2xf32, #tpu.memory_space<vmem>>, vector<1x8x2xf32>
      %35 = vector.shape_cast %34 : vector<1x8x2xf32> to vector<8x2xf32>
      %36 = vector.shape_cast %33 : vector<8x2xf32> to vector<1x8x2xf32>
      tpu.vector_store %arg5[%c0_18, %c0_19, %c0_20], %36 {strides = array<i32>} : memref<1x8x2xf32, #tpu.memory_space<vmem>>, vector<1x8x2xf32>,
    } else {
    }
    %c0_11 = arith.constant 0 : index
    %c0_12 = arith.constant 0 : index
    %c0_13 = arith.constant 0 : index
    %27 = vector.load %arg5[%c0_11, %c0_12, %c0_13] : memref<1x8x2xf32, #tpu.memory_space<vmem>>, vector<1x8x2xf32>
    %28 = vector.shape_cast %27 : vector<1x8x2xf32> to vector<8x2xf32>
    %29 = arith.addf %28, %23 : vector<8x2xf32>
    %c0_14 = arith.constant 0 : index
    %c0_15 = arith.constant 0 : index
    %c0_16 = arith.constant 0 : index
    %30 = vector.load %arg5[%c0_14, %c0_15, %c0_16] : memref<1x8x2xf32, #tpu.memory_space<vmem>>, vector<1x8x2xf32>
    %31 = vector.shape_cast %30 : vector<1x8x2xf32> to vector<8x2xf32>
    %32 = vector.shape_cast %29 : vector<8x2xf32> to vector<1x8x2xf32>
    tpu.vector_store %arg5[%c0_14, %c0_15, %c0_16], %32 {strides = array<i32>} : memref<1x8x2xf32, #tpu.memory_space<vmem>>, vector<1x8x2xf32>,
    return
  }
  func.func @transform_0(%arg0: i32, %arg1: i32) -> (i32, i32, i32) {
    %c0_i32 = arith.constant 0 : i32
    %c0_i32_0 = arith.constant 0 : i32
    return %arg0, %c0_i32, %arg1 : i32, i32, i32
  }
  func.func @transform_1(%arg0: i32, %arg1: i32) -> (i32, i32, i32) {
    %c1_i32 = arith.constant 1 : i32
    %0 = arith.addi %arg1, %c1_i32 : i32
    %c1_i32_0 = arith.constant 1 : i32
    %1 = arith.muli %0, %c1_i32_0 : i32
    %c0_i32 = arith.constant 0 : i32
    %c0_i32_1 = arith.constant 0 : i32
    return %arg0, %c0_i32, %1 : i32, i32, i32
  }
  func.func @transform_2(%arg0: i32, %arg1: i32) -> (i32, i32) {
    %c0_i32 = arith.constant 0 : i32
    %c0_i32_0 = arith.constant 0 : i32
    %c0_i32_1 = arith.constant 0 : i32
    return %c0_i32, %c0_i32_0 : i32, i32
  }
  func.func @transform_3(%arg0: i32, %arg1: i32) -> (i32, i32, i32) {
    %c0_i32 = arith.constant 0 : i32
    %c0_i32_0 = arith.constant 0 : i32
    %c0_i32_1 = arith.constant 0 : i32
    return %arg0, %c0_i32, %c0_i32_0 : i32, i32, i32
  }
}

</mosaic_0001>

<bundles_post_ra>
// kernel: tpu_custom_call.1
= control target key start
LH: loop header
LB: loop body
LE: loop exit
PB: predicated region body
PF: predicated region fallthrough
CT: control target
= control target key end

     0   :  { %s847_s0 = inlined_call_operand.hbm [shape: f32[2,4,256], index: 0, kind: input, shape index: {}]   ;;  %s848_s1 = inlined_call_operand.hbm [shape: f32[2,4,256], index: 1, kind: input, shape index: {}]   ;;  %s849_s2 = inlined_call_operand.hbm [shape: f32[8,12], index: 2, kind: input, shape index: {}]   ;;  %s850_s3 = inlined_call_operand.vmem [shape: f32[2,8,2], index: 3, kind: output, shape index: {}]  }
   0x1   :  { %852 = sst [smem:[#allocation10_spill]] %s849_s2 }
   0x2   :  { %8 = vsyncpa [#allocation3], 0 }
   0x3   :  { %10 = vsyncpa [#allocation3 + $0x1], 0 }
   0x4   :  { %11 = vsyncpa [#allocation5], 0 }
   0x5   :  { %13 = vsyncpa [#allocation5 + $0x1], 0  ;;  %s722_s12 = smov 0   ;;  %s724_s13 = smov 0  }
   0x6   :  { %s726_s14 = smov 0   ;;  %s728_s15 = smov 0  }
   0x7   :  { %s730_s16 = smov 0   ;;  %s732_s17 = smov 0  }
   0x8 LB: > { %s851_s18 = sadd.s32 4294967295, %s696_s17   ;;  %p53_p0 = scmp.ne.s32.totalorder %s680_s13, %s676_s12  ;;  %s696_s17 = sphi %s732_s17, %s19_s17   ;;  %s692_s16 = sphi %s730_s16, %s863_s16   ;;  %s688_s15 = sphi %s728_s15, %s862_s15   ;;  %s684_s14 = sphi %s726_s14, %s861_s14   ;;  %s680_s13 = sphi %s724_s13, %s860_s13   ;;  %s676_s12 = sphi %s722_s12, %s859_s12  }
   0x9   : > { %p754_p1 = scmp.eq.s32.totalorder %s851_s18, 0  ;;  %p449_p2 = scmp.ge.s32.totalorder %s696_s17, 1 }
   0xa   : > { %p141_p3 = scmp.lt.s32.totalorder %s696_s17, 3  ;;  %s855_s2 = sld [smem:[#allocation10_spill]] }
   0xb   : > { %p762_p4 = por %p754_p1, %p53_p0  ;;  %s698_s25 = smov [#allocation6]  }
   0xc   : > { %p769_p5 = pnand %p449_p2, %p141_p3  ;;  %s155_s26 = sshll.u32 %s698_s25, 4  ;;  %s156_s26 = int_to_ptr.vmem [resolvable:$true] %s155_s26 }
   0xd   : > { %s31_s27 = sadd.s32 1, %s692_s16  ;;  %s40_s28 = sadd.s32 1, %s684_s14 }
   0xe   : > { %p477_p6 = pneg %p769_p5  ;;  %p33_p8 = scmp.ge.s32.totalorder %s31_s27, 2 }
   0xf   : > { %p47_p9 = scmp.ne.s32.totalorder %s684_s14, %s680_s13  ;;  %p48_p10 = scmp.eq.s32.totalorder %s696_s17, 0 }
  0x10   : > { %s153_s23 = sshll.u32 %s855_s2, 4  ;;  %p478_p7 = pnand %p477_p6, %p754_p1  ;;  %s154_s23 = int_to_ptr.hbm [resolvable:$true] %s153_s23 }
  0x11   : > { %s865_s27 = smov (%p33_p8, %s31_s27), 0  ;;  %p784_p11 = por %p48_p10, %p47_p9 }
  0x12   : > { %480 = dma.hbm_to_vmem [thread:$0]  (!%p478_p7), %s154_s23, 128, %s156_s26, [#allocation5]  }
  0x13   : > { %p489_p12 = scmp.lt.s32.totalorder %s696_s17, 2  ;;  %s35_s30 = ssub.s32 %s692_s16, %s865_s27 }
  0x14   : > { %s166_s4 = sand.u32 1, %s684_s14   ;;  %p38_p13 = scmp.eq.s32.totalorder %s35_s30, 0 }
  0x15   : > { %s452_s5 = sshll.u32 %s166_s4, 2  ;;  %s467_s6 = sshll.u32 %s692_s16, 3 }
  0x16   : > { %s794_s7 = scalar_select %p38_p13, %s684_s14, %s40_s28  }
  0x17   : > { %s176_s10 = scalar_lea.hbm %s847_s0, %s467_s6  ;;  %s170_s12 = scalar_lea.vmem [#allocation2], %s452_s5 }
  0x18   : > { %s178_s11 = sshll.u32 %s176_s10, 4  ;;  %s180_s21 = sshll.u32 %s170_s12, 4  ;;  %s179_s11 = int_to_ptr.hbm [resolvable:$true] %s178_s11  ;;  %s181_s21 = int_to_ptr.vmem [resolvable:$true] %s180_s21 }
  0x19   : > { %p482_p0 = pnand %p489_p12, %p784_p11  ;;  %s375_s25 = scalar_lea.hbm %s848_s1, %s467_s6 }
  0x1a   : > { %s187_s26 = sand.u32 1, %s696_s17   ;;  %s167_s30 = scalar_lea.sflag [#allocation3], %s166_s4 }
  0x1b   : > { %484 = dma.hbm_to_vmem [thread:$0]  (!%p482_p0), %s179_s11, 64, %s181_s21, %s167_s30  }
  0x1c   : > { %s376_s28 = scalar_lea.hbm %s375_s25, 4  ;;  %s191_s18 = scalar_lea.vmem [#allocation4], %s452_s5 }
  0x1d   : > { %s202_s2 = sshll.u32 %s191_s18, 4  ;;  %s200_s8 = sshll.u32 %s376_s28, 4  ;;  %s203_s2 = int_to_ptr.vmem [resolvable:$true] %s202_s2  ;;  %s201_s8 = int_to_ptr.hbm [resolvable:$true] %s200_s8 }
  0x1e   : > { %s188_s9 = scalar_lea.sflag [#allocation5], %s187_s26  ;;  %211 = sbr.rel (%p769_p5) target bundleno = 420 (0x1a4), region = 32 }
  0x1f   : > { %487 = dma.hbm_to_vmem [thread:$0]  (!%p482_p0), %s201_s8, 64, %s203_s2, %s188_s9  }
  0x20   : > { %s213_s29 = sand.u32 (!%p769_p5), 1, %s680_s13  }
  0x21   : > { %s459_s10 = sshll.u32 (!%p769_p5), %s213_s29, 2  ;;  %s214_s12 = scalar_lea.sflag (!%p769_p5), [#allocation3], %s213_s29 }
  0x22   : > { %s217_s6 = scalar_lea.vmem (!%p769_p5), [#allocation2], %s459_s10 }
  0x23   : > { %663 = dma.done.wait (%p762_p4), %s214_s12, 64  }
  0x24   : > { %665 = vsyncadd (%p762_p4), %s214_s12, 4294967232  ;;  %s858_s18 = sadd.s32 4294967295, %s696_s17   ;;  %s227_s2 = scalar_lea.vmem [#allocation4], %s459_s10 }
  0x25   : > { %s223_s4 = sand.u32 1, %s858_s18  }
  0x26   : > { %s224_s5 = scalar_lea.sflag [#allocation5], %s223_s4 }
  0x27   : > { %667 = dma.done.wait (%p762_p4), %s224_s5, 64  }
  0x28   : > { %669 = vsyncadd (%p762_p4), %s224_s5, 4294967232 }
  0x29   : > { %671 = dma.done.wait (%p754_p1), [#allocation5], 128  }
  0x2a   : > { %673 = vsyncadd (%p754_p1), [#allocation5], 4294967168  ;;  %v265_v0 = vld [vmem:[%s217_s6] sm:$0xf]  ;;  %v266_v1 = vld [vmem:[%s227_s2] sm:$0xf]  ;;  %v315_v14 = vlaneseq }
  0x2b   : > { %s699_s24 = smov 126   ;;  %v270_v2 = vrot.slane %v265_v0, 4  ;;  %v271_v3 = vrot.slane %v266_v1, 4  ;;  %s700_s11 = smov 127   ;;  %vm276_vm0 = vcmask 1039360   ;;  %vm283_vm1 = vcmask 1031168  }
  0x2c   : > { %279 = vrot.lane.b32.xlu0 %v265_v0, %s699_s24  ;;  %vm285_vm2 = vcmask 1043456   ;;  %v267_v13 = vld [vmem:[#allocation6] sm:$0xff]  ;;  %vm287_vm3 = vcmask 97280   ;;  %v316_v15 = vand.u32 127, %v315_v14  ;;  %p261_p1 = scmp.lt.s32.totalorder %s688_s15, 1  ;;  %vm331_vm5 = vcmask 15360  }
  0x2d   : > { %v543_v4 = vpack.i.bf16 %v271_v3, %v270_v2  ;;  %v701_v19 = vmov 0.0   ;;  %vm325_vm6 = vcmask 7168  }
  0x2e   : > { %vm318_vm4 = vcmp.lt.s32.totalorder %v316_v15, 16  ;;  %s867_s15 = smov (!%p261_p1, %s688_s15), 1 }
  0x2f   : > { %544 = vrot.lane.b32.xlu1 %v543_v4, %s700_s11  ;;  %s462_s19 = sshll.u32 %s867_s15, 3 }
  0x30   : > { %s264_s22 = scalar_lea.vmem %s850_s3, %s462_s19 }
  0x31   : > { %332 = vst.msk [vmem:[%s264_s22] sm:$0xff] %vm331_vm5, %v701_v19 }
  0x34   : > { %281 = vrot.lane.b32.xlu0 %v266_v1, %s699_s24 }
  0x38   : > { %v333_v20 = vld [vmem:[%s264_s22] sm:$0xff] }
  0x9e   : > { %v280_v5 = vpop.permute.xlu0 %279 }
  0xa1   : > { %v545_v6 = vpop.permute.xlu1 %544 }
  0xa2   : > { %v547_v7 = vunpack.i.h.bf16 %v545_v6  ;;  %v546_v8 = vunpack.i.l.bf16 %v545_v6 }
  0xa4   : > { %v277_v9 = vsel %vm276_vm0, %v546_v8, %v547_v7 }
  0xa5   : > { %v286_v12 = vsel %vm285_vm2, %v265_v0, %v277_v9 }
  0xa6   : > { %v282_v10 = vpop.permute.xlu0 %281 }
  0xa7   : > { %v284_v11 = vsel %vm283_vm1, %v280_v5, %v282_v10 }
  0xa8   : > { %463 = vmatpush.msk.msra.mxu0 %vm285_vm2, %v284_v11 }
  0xaa   : > { %308 = vmatpush.msra.mxu0 %v286_v12 }
  0xab   : > { %464 = vmatmul.msk.f32.vlgmr.msra.gmra.mxu0 %vm287_vm3, %v267_v13 }
 0x128   : > { %v310_v16 = vpop.f32.mrf.mxu0 }
 0x129   : > { %v319_v17 = vsel %vm318_vm4, %v310_v16, 0.0 }
 0x12a   : > { %320 = vadd.xlane.f32.xlu1 %v319_v17  ;;  %v322_v18 = vmul.f32 %v319_v17, %v319_v17 }
 0x12c   : > { %323 = vadd.xlane.f32.xlu2 %v322_v18 }
 0x19d   : > { %v321_v21 = vpop.xlane.xlu1 %320 }
 0x19f   : > { %v324_v22 = vpop.xlane.xlu2 %323 }
 0x1a0   : > { %v326_v23 = vsel %vm325_vm6, %v321_v21, %v324_v22 }
 0x1a1   : > { %v334_v24 = vadd.f32 %v333_v20, %v326_v23 }
 0x1a3   : > { %336 = vst.msk [vmem:[%s264_s22] sm:$0xff] %vm331_vm5, %v334_v24 }
 0x1a4 PF: > { %s19_s17 = sadd.s32 1, %s696_s17   ;;  %s859_s12 = smov %s680_s13 }
 0x1a5   : > { %p16_p2 = scmp.ge.s32.totalorder %s19_s17, 4   ;;  %s860_s13 = smov %s684_s14 }
 0x1a6   : > { %s861_s14 = smov %s794_s7  ;;  %s862_s15 = smov %s692_s16 }
 0x1a7   : > { %s863_s16 = smov %s865_s27  ;;  %18 = sbr.rel (!%p16_p2) target bundleno = 8 (0x8), region = 93 }
 0x1ac   :  { %356 = vsyncpa [#allocation3], 1 }
 0x1ad   :  { %358 = vsyncpa [#allocation3 + $0x1], 1 }
 0x1ae   :  { %359 = vsyncpa [#allocation5], 1 }
 0x1af   :  { %361 = vsyncpa [#allocation5 + $0x1], 1 }

</bundles_post_ra>
